<compile_context>
chip_gen: v7x
topology: tpu7x:2x2x1
jax: 0.10.0
libtpu: 0.0.40
codegen_flags: <defaults>
</compile_context>

<pallas_src>
import functools

import numpy as np
import jax
import jax.numpy as jnp
from jax import lax
from jax.experimental import pallas as pl
from jax.experimental.pallas import tpu as pltpu

EPS = 1e-5  # nn.BatchNorm3d default eps


# ----------------------------------------------------------------------------
# Static (host-side) helpers
# ----------------------------------------------------------------------------
def _round_up(x, m):
    return ((x + m - 1) // m) * m


def _cpad(c):
    """Channel counts are padded to >= 8 and a multiple of 8 (sublane tile)."""
    return max(8, _round_up(c, 8))


def _tap_deltas(hp, wp):
    """Flat lane offset of each of the 27 conv taps in the padded-flat layout."""
    return tuple(((kd - 1) * hp + (kh - 1)) * wp + (kw - 1)
                 for kd in range(3) for kh in range(3) for kw in range(3))


def _pool_deltas(hp, wp):
    """Flat lane offsets of the 8 corners of a 2x2x2 pooling window."""
    return tuple((ed * hp + eh) * wp + ew
                 for ed in range(2) for eh in range(2) for ew in range(2))


def _build_mask(n, d, h, w, lp):
    """[1, lp] f32: 1.0 at interior (non-pad) positions of the padded-flat layout."""
    dp, hp, wp = d + 2, h + 2, w + 2
    l = n * dp * hp * wp
    idx = np.arange(lp)
    wi = idx % wp
    hi = (idx // wp) % hp
    di = (idx // (wp * hp)) % dp
    valid = ((idx < l) & (wi >= 1) & (wi <= w) & (hi >= 1) & (hi <= h)
             & (di >= 1) & (di <= d))
    return valid.astype(np.float32).reshape(1, lp)


def _build_pool_select(n, d, h, w, lp_fine, lp_coarse):
    """0/1 matrix S so that (pooled_full @ S)[c, j] picks, for every coarse
    interior position j, the fine-grid anchor of its 2x2x2 window (and zeros
    every coarse pad column)."""
    dp, hp, wp = d + 2, h + 2, w + 2
    d2, h2, w2 = d // 2, h // 2, w // 2
    d2p, h2p, w2p = d2 + 2, h2 + 2, w2 + 2
    s = np.zeros((lp_fine, lp_coarse), np.float32)
    for ni in range(n):
        for dd in range(1, d2 + 1):
            for hh in range(1, h2 + 1):
                for ww in range(1, w2 + 1):
                    col = ((ni * d2p + dd) * h2p + hh) * w2p + ww
                    row = (((ni * dp + 2 * dd - 1) * hp + 2 * hh - 1) * wp
                           + 2 * ww - 1)
                    s[row, col] = 1.0
    return s


# ----------------------------------------------------------------------------
# Operand packing (tiny trace-time reshapes, not per-voxel work)
# ----------------------------------------------------------------------------
def _pack_weight(w, cinp, coutp):
    """[3,3,3,cin,cout] (DHWIO) -> [coutp, 27*cinp], tap-major / cin-minor."""
    cin, cout = w.shape[3], w.shape[4]
    wt = jnp.transpose(w, (4, 0, 1, 2, 3)).reshape(cout, 27, cin)
    wt = jnp.pad(wt, ((0, coutp - cout), (0, 0), (0, cinp - cin)))
    return wt.reshape(coutp, 27 * cinp)


def _pack_vec(v, coutp):
    return jnp.pad(v, (0, coutp - v.shape[0])).reshape(coutp, 1)


def _pack_input(x_ncdhw, cinp, lp):
    """NCDHW (C==1) -> channel-padded, zero-halo, transposed flat layout
    [cinp, lp] (channels on sublanes, flat padded voxel index on lanes)."""
    n, c, d, h, w = x_ncdhw.shape
    dp, hp, wp = d + 2, h + 2, w + 2
    xp = jnp.zeros((cinp, n, dp, hp, wp), jnp.float32)
    xp = xp.at[:c, :, 1:-1, 1:-1, 1:-1].set(
        jnp.transpose(x_ncdhw, (1, 0, 2, 3, 4)).astype(jnp.float32))
    xp = xp.reshape(cinp, n * dp * hp * wp)
    return jnp.pad(xp, ((0, 0), (0, lp - xp.shape[1])))


def _unpack_output(o, n, d, h, w, cout):
    """[coutp, lp] transposed padded-flat -> NCDHW interior."""
    dp, hp, wp = d + 2, h + 2, w + 2
    o = o[:cout, :n * dp * hp * wp].reshape(cout, n, dp, hp, wp)
    return jnp.transpose(o[:, :, 1:-1, 1:-1, 1:-1], (1, 0, 2, 3, 4))


# ----------------------------------------------------------------------------
# The fused Pallas kernel
# ----------------------------------------------------------------------------
def _encoder_kernel(*refs, blocks):
    """Whole EncoderUNet3D forward in a single kernel invocation.

    refs: x, 6x weight, 6x gamma, 6x beta, 3x mask, 2x pool-select,
          3x output, 1x im2col VMEM scratch.
    blocks: 3 static tuples (tap_shifts, pool_shifts, lp, n_valid, (cinp, cinp)).
    """
    assert len(refs) == 28
    x_ref = refs[0]
    w_refs = refs[1:7]
    g_refs = refs[7:13]
    b_refs = refs[13:19]
    m_refs = refs[19:22]
    s_refs = refs[22:24]
    out_refs = refs[24:27]
    col_ref = refs[27]

    def conv_bn_relu(act, w_ref, g_ref, b_ref, mask, tap_shifts, cinp,
                     n_valid, lp):
        # -- in-kernel im2col: 27 lane-rotated copies -> [27*cinp, lp] scratch
        kk = len(tap_shifts) * cinp
        for k, shift in enumerate(tap_shifts):
            tap = act if shift == 0 else pltpu.roll(act, shift, 1)
            col_ref[k * cinp:(k + 1) * cinp, :lp] = tap
        # -- ONE big-K GEMM on the MXU: [coutp, 27*cinp] @ [27*cinp, lp] ------
        y = jnp.dot(w_ref[...], col_ref[:kk, :lp],
                    preferred_element_type=jnp.float32)
        # -- BatchNorm training-mode statistics over valid voxels only --------
        inv_n = 1.0 / float(n_valid)
        mean = jnp.sum(y * mask, axis=1, keepdims=True) * inv_n
        diff = (y - mean) * mask
        var = jnp.sum(diff * diff, axis=1, keepdims=True) * inv_n
        scale = g_ref[...] * lax.rsqrt(var + EPS)
        shift_ = b_ref[...] - mean * scale
        # -- affine + ReLU; zero the pad columns so the layout chains ---------
        return jnp.maximum(y * scale + shift_, 0.0) * mask

    def maxpool_to_next(act, s_ref, pool_shifts, lp):
        # 8-corner max at the window anchors, while still in VMEM ...
        pooled = act
        for shift in pool_shifts:
            if shift:
                pooled = jnp.maximum(pooled, pltpu.roll(act, shift, 1))
        # ... then gather the anchors into the next block's padded-flat layout
        # with a 0/1 selection matmul (keeps the whole network in one kernel).
        return jnp.dot(pooled, s_ref[...], preferred_element_type=jnp.float32)

    act = x_ref[...]
    li = 0
    for bi, (tap_shifts, pool_shifts, lp, n_valid, cinps) in enumerate(blocks):
        mask = m_refs[bi][...]
        for cinp in cinps:
            act = conv_bn_relu(act, w_refs[li], g_refs[li], b_refs[li], mask,
                               tap_shifts, cinp, n_valid, lp)
            li += 1
        out_refs[bi][...] = act                     # conv{b}_2 (lane-dense)
        if bi < 2:
            act = maxpool_to_next(act, s_refs[bi], pool_shifts, lp)


# ----------------------------------------------------------------------------
# Roll-convention probe (makes the tap shifts robust to pltpu.roll's direction)
# ----------------------------------------------------------------------------
def probe_roll_convention():
    """True iff pltpu.roll(x, s, axis) matches np.roll (data moves to higher
    indices for positive s).  The backward tap shifts are derived from this."""
    def k(x_ref, o_ref):
        o_ref[...] = pltpu.roll(x_ref[...], 1, 1)
    x = jnp.tile(jnp.arange(256, dtype=jnp.float32)[None, :], (8, 1))
    out = pl.pallas_call(
        k, out_shape=jax.ShapeDtypeStruct((8, 256), jnp.float32))(x)
    return bool(out[0, 0] == 255.0)


# ----------------------------------------------------------------------------
# Forward wrapper
# ----------------------------------------------------------------------------
def encoder_unet3d_forward(x_ncdhw, params, *, roll_like_numpy=True):
    """Returns (conv1_2, conv2_2, conv3_2), each in PyTorch NCDHW layout."""
    n, _, d, h, w = x_ncdhw.shape
    layer_names = ("conv1_1", "conv1_2", "conv2_1", "conv2_2",
                   "conv3_1", "conv3_2")

    # ---- static geometry per block ------------------------------------
    geoms = []
    dd, hh, ww = d, h, w
    for _ in range(3):
        dp, hp, wp = dd + 2, hh + 2, ww + 2
        geoms.append(dict(d=dd, h=hh, w=ww, hp=hp, wp=wp,
                          lp=_round_up(n * dp * hp * wp, 128),  # lane-dense
                          n_valid=n * dd * hh * ww))
        dd, hh, ww = dd // 2, hh // 2, ww // 2

    # ---- static channel config per layer --------------------------------
    cfgs = []
    for name in layer_names:
        cin, cout = params[name]["w"].shape[3], params[name]["w"].shape[4]
        cfgs.append(dict(name=name, cin=cin, cout=cout,
                         cinp=_cpad(cin), coutp=_cpad(cout)))

    def bwd_shift(delta, lp):
        # roll amount such that rolled[:, m] == act[:, m + delta]
        return (-delta) % lp if roll_like_numpy else delta % lp

    blocks_static = tuple(
        (tuple(bwd_shift(dl, g["lp"]) for dl in _tap_deltas(g["hp"], g["wp"])),
         tuple(bwd_shift(dl, g["lp"]) for dl in _pool_deltas(g["hp"], g["wp"])),
         g["lp"], g["n_valid"],
         (cfgs[2 * i]["cinp"], cfgs[2 * i + 1]["cinp"]))
        for i, g in enumerate(geoms))

    # ---- packed operands -------------------------------------------------
    w_in, g_in, b_in = [], [], []
    for cfg in cfgs:
        p = params[cfg["name"]]
        w_in.append(_pack_weight(p["w"], cfg["cinp"], cfg["coutp"]))
        g_in.append(_pack_vec(p["gamma"], cfg["coutp"]))
        b_in.append(_pack_vec(p["beta"], cfg["coutp"]))
        # Conv bias intentionally omitted: training-mode BN subtracts the
        # batch mean, so a per-channel bias cancels exactly.

    masks = [jnp.asarray(_build_mask(n, g["d"], g["h"], g["w"], g["lp"]))
             for g in geoms]
    sels = [jnp.asarray(_build_pool_select(n, geoms[i]["d"], geoms[i]["h"],
                                           geoms[i]["w"], geoms[i]["lp"],
                                           geoms[i + 1]["lp"]))
            for i in range(2)]
    x_in = _pack_input(x_ncdhw, cfgs[0]["cinp"], geoms[0]["lp"])

    out_shape = tuple(
        jax.ShapeDtypeStruct((cfgs[2 * i + 1]["coutp"], geoms[i]["lp"]),
                             jnp.float32) for i in range(3))
    col_shape = (max(27 * c["cinp"] for c in cfgs),
                 max(g["lp"] for g in geoms))

    outs = pl.pallas_call(
        functools.partial(_encoder_kernel, blocks=blocks_static),
        out_shape=out_shape,
        scratch_shapes=[pltpu.VMEM(col_shape, jnp.float32)],
        compiler_params=pltpu.CompilerParams(
            vmem_limit_bytes=32 * 1024 * 1024),
    )(x_in, *w_in, *g_in, *b_in, *masks, *sels)

    return tuple(
        _unpack_output(outs[i], n, geoms[i]["d"], geoms[i]["h"], geoms[i]["w"],
                       cfgs[2 * i + 1]["cout"])
        for i in range(3))


# ----------------------------------------------------------------------------
# Parameters (deterministic in-script init; shapes from EncoderUNet3D.__init__)
# ----------------------------------------------------------------------------
def init_params(n0, key):
    n1, n2, n3 = n0, 2 * n0, 4 * n0
    layer_io = {
        "conv1_1": (1, n1), "conv1_2": (n1, n1),
        "conv2_1": (n1, n2), "conv2_2": (n2, n2),
        "conv3_1": (n2, n3), "conv3_2": (n3, n3),
    }
    params = {}
    for name, (cin, cout) in layer_io.items():
        key, kw, kb, kg, kbt = jax.random.split(key, 5)
        fan_in = 27 * cin
        params[name] = dict(
            w=jax.random.normal(kw, (3, 3, 3, cin, cout), jnp.float32)
              / jnp.sqrt(float(fan_in)),
            b=0.1 * jax.random.normal(kb, (cout,), jnp.float32),
            gamma=1.0 + 0.1 * jax.random.normal(kg, (cout,), jnp.float32),
            beta=0.1 * jax.random.normal(kbt, (cout,), jnp.float32),
        )
    return params


# ----------------------------------------------------------------------------
# Pure-JAX reference (correctness check only; keeps the conv bias)
# ----------------------------------------------------------------------------
def _ref_conv_bn_relu(x, w, b, gamma, beta):
    y = lax.conv_general_dilated(
        x, w, window_strides=(1, 1, 1), padding="SAME",
        dimension_numbers=("NDHWC", "DHWIO", "NDHWC"))
    y = y + b
    mean = jnp.mean(y, axis=(0, 1, 2, 3), keepdims=True)
    var = jnp.mean((y - mean) ** 2, axis=(0, 1, 2, 3), keepdims=True)
    y = (y - mean) / jnp.sqrt(var + EPS) * gamma + beta
    return jnp.maximum(y, 0.0)


def _ref_maxpool3d(x):
    n, d, h, w, c = x.shape
    return x.reshape(n, d // 2, 2, h // 2, 2, w // 2, 2, c).max(axis=(2, 4, 6))


def _ref_forward(x_ncdhw, params):
    x = jnp.transpose(x_ncdhw, (0, 2, 3, 4, 1)).astype(jnp.float32)
    c1_1 = _ref_conv_bn_relu(x, **params["conv1_1"])
    c1_2 = _ref_conv_bn_relu(c1_1, **params["conv1_2"])
    p1 = _ref_maxpool3d(c1_2)
    c2_1 = _ref_conv_bn_relu(p1, **params["conv2_1"])
    c2_2 = _ref_conv_bn_relu(c2_1, **params["conv2_2"])
    p2 = _ref_maxpool3d(c2_2)
    c3_1 = _ref_conv_bn_relu(p2, **params["conv3_1"])
    c3_2 = _ref_conv_bn_relu(c3_1, **params["conv3_2"])
    to_ncdhw = lambda t: jnp.transpose(t, (0, 4, 1, 2, 3))
    return to_ncdhw(c1_2), to_ncdhw(c2_2), to_ncdhw(c3_2)


# ----------------------------------------------------------------------------
if __name__ == "__main__":
    n0 = 4                       # -> channels 4 / 8 / 16
    N, Din, Hin, Win = 2, 8, 8, 8

    key = jax.random.PRNGKey(0)
    k_x, k_p = jax.random.split(key)
    x = jax.random.normal(k_x, (N, 1, Din, Hin, Win), jnp.float32)   # NCDHW
    params = init_params(n0, k_p)

    roll_like_numpy = probe_roll_convention()
    fwd = jax.jit(functools.partial(encoder_unet3d_forward,
                                    roll_like_numpy=roll_like_numpy))
    outs = jax.block_until_ready(fwd(x, params))

    refs = _ref_forward(x, params)
    for o, r in zip(outs, refs):
        assert o.shape == r.shape, (o.shape, r.shape)
        err = float(jnp.max(jnp.abs(o - r)))
        assert err < 1e-3, err

    print("KERNEL_OK")
</pallas_src>

<mosaic_0001>
module attributes {stable_mosaic.version = 11 : i64} {
  func.func @k(%arg0: memref<8x256xf32, #tpu.memory_space<vmem>>, %arg1: memref<8x256xf32, #tpu.memory_space<vmem>>) attributes {dimension_semantics = [], scalar_prefetch = 0 : i64, scratch_operands = 0 : i64, tpu.core_type = #tpu.core_type<tc>} {
    %c0 = arith.constant 0 : index
    %c0_0 = arith.constant 0 : index
    %0 = vector.load %arg0[%c0, %c0_0] : memref<8x256xf32, #tpu.memory_space<vmem>>, vector<8x256xf32>
    %c1_i32 = arith.constant 1 : i32
    %1 = tpu.dynamic_rotate %0 by %c1_i32 dim 1 : vector<8x256xf32>, i32 -> vector<8x256xf32>
    %c0_1 = arith.constant 0 : index
    %c0_2 = arith.constant 0 : index
    %2 = vector.load %arg1[%c0_1, %c0_2] : memref<8x256xf32, #tpu.memory_space<vmem>>, vector<8x256xf32>
    tpu.vector_store %arg1[%c0_1, %c0_2], %1 {strides = array<i32>} : memref<8x256xf32, #tpu.memory_space<vmem>>, vector<8x256xf32>,
    return
  }
}

</mosaic_0001>

<bundles_post_ra>
// kernel: tpu_custom_call.1
= control target key start
LH: loop header
LB: loop body
LE: loop exit
PB: predicated region body
PF: predicated region fallthrough
CT: control target
= control target key end

     0   :  { %6 = vsyncpa [#allocation3], 0  ;;  %s137_s0 = inlined_call_operand.hbm [shape: f32[8,256], index: 0, kind: input, shape index: {}]   ;;  %s138_s1 = inlined_call_operand.hbm [shape: f32[8,256], index: 1, kind: output, shape index: {}]  }
   0x1   :  { %7 = vsyncpa [#allocation4], 0  ;;  %s100_s6 = smov [#allocation2]   ;;  %s52_s10 = scalar_lea.hbm %s137_s0, 256 }
   0x2   :  { %s14_s7 = sshll.u32 %s100_s6, 4  ;;  %p53_p0 = scmp.ne.s32.totalorder %s137_s0, %s52_s10  ;;  %s15_s7 = int_to_ptr.vmem [resolvable:$true] %s14_s7 }
   0x3   :  { %p56_p1 = scmp.lt.u32.totalorder %s52_s10, %s137_s0 }
   0x5   :  { %p58_p2 = pnand %p56_p1, %p53_p0 }
   0x7   :  { %61 = shalt.err (!%p58_p2)
}
   0x8   :  { %s62_s15 = scalar_lea.vmem %s15_s7, 256  ;;  %p67_p4 = scmp.lt.s32.totalorder %s15_s7, %s15_s7 }
   0x9   :  { %p63_p3 = scmp.ne.s32.totalorder %s15_s7, %s62_s15  ;;  %p68_p5 = scmp.lt.s32.totalorder %s62_s15, %s62_s15 }
   0xb   :  { %p69_p6 = por %p68_p5, %p67_p4 }
   0xd   :  { %p70_p7 = pnand %p69_p6, %p63_p3 }
   0xf   :  { %73 = shalt.err (!%p70_p7)
}
  0x10   :  { %17 = dma.hbm_to_vmem [thread:$0]  %s137_s0, 256, %s15_s7, [#allocation3]  }
  0x11   :  { %96 = dma.done.wait [#allocation3], 256  }
  0x12   :  { %97 = vsyncadd [#allocation3], 4294967040  ;;  %v21_v0 = vld [vmem:[#allocation2] sm:$0xff]  ;;  %s101_s18 = smov 1   ;;  %v22_v1 = vld [vmem:[#allocation2 + $0x8] sm:$0xff]  ;;  %v27_v2 = vlaneseq  ;;  %s102_s19 = smov [#allocation5]  }
  0x13   :  { %23 = vrot.lane.b32.xlu0 %v21_v0, %s101_s18  ;;  %s40_s20 = sshll.u32 %s102_s19, 4  ;;  %s41_s20 = int_to_ptr.vmem [resolvable:$true] %s40_s20 }
  0x14   :  { %v28_v3 = vand.u32 127, %v27_v2  ;;  %s74_s0 = scalar_lea.vmem %s41_s20, 256  ;;  %p79_p9 = scmp.lt.s32.totalorder %s41_s20, %s41_s20 }
  0x15   :  { %p75_p8 = scmp.ne.s32.totalorder %s41_s20, %s74_s0  ;;  %p80_p10 = scmp.lt.s32.totalorder %s74_s0, %s74_s0 }
  0x16   :  { %vm29_vm0 = vcmp.lt.s32.totalorder %v28_v3, 1 }
  0x17   :  { %25 = vrot.lane.b32.xlu0 %v22_v1, %s101_s18  ;;  %p81_p11 = por %p80_p10, %p79_p9 }
  0x19   :  { %p82_p12 = pnand %p81_p11, %p75_p8 }
  0x85   :  { %v24_v4 = vpop.permute.xlu0 %23 }
  0x89   :  { %v26_v5 = vpop.permute.xlu0 %25 }
  0x8a   :  { %v30_v6 = vsel %vm29_vm0, %v24_v4, %v26_v5  ;;  %v31_v7 = vsel %vm29_vm0, %v26_v5, %v24_v4 }
  0x8b   :  { %32 = vst [vmem:[#allocation5] sm:$0xff] %v31_v7  ;;  %33 = vst [vmem:[#allocation5 + $0x8] sm:$0xff] %v30_v6 }
  0x8c   :  { %85 = shalt.err (!%p82_p12)
}
  0x8d   :  { %s86_s23 = scalar_lea.hbm %s138_s1, 256 }
  0x8e   :  { %p87_p13 = scmp.ne.s32.totalorder %s138_s1, %s86_s23  ;;  %p90_p0 = scmp.lt.u32.totalorder %s86_s23, %s138_s1 }
  0x90   :  { %p92_p1 = pnand %p90_p0, %p87_p13 }
  0x92   :  { %95 = shalt.err (!%p92_p1)
}
  0x93   :  { %43 = dma.vmem_to_hbm [thread:$0]  %s41_s20, 256, %s138_s1, [#allocation4]  }
  0x94   :  { %98 = dma.done.wait [#allocation4], 256  }
  0x95   :  { %99 = vsyncadd [#allocation4], 4294967040 }
  0x96   :  { %47 = vsyncpa [#allocation3], 1 }
  0x97   :  { %48 = vsyncpa [#allocation4], 1 }

</bundles_post_ra>
